<compile_context>
chip_gen: v7x
topology: tpu7x:2x2x1
jax: 0.10.0
libtpu: 0.0.40
codegen_flags: <defaults>
</compile_context>

<pallas_src>
import numpy as np
import jax
import jax.numpy as jnp
from jax.experimental import pallas as pl
from jax.experimental.pallas import tpu as pltpu


def _gnn_edge_mlp_kernel(x_ref, ss_ref, sr_ref, w1s_ref, w1r_ref,
                         b1_ref, w2_ref, b2_ref, o_ref):
    """Fused per-batch-tile edge MLP.

    x_ref  : (TB, N, F)      node features for TB batches
    ss_ref : (Epb, N)        one-hot sender selection  (Epb = N*(N-1))
    sr_ref : (Epb, N)        one-hot receiver selection
    w1s/w1r: (F, H)          layer-1 weight halves (sender / receiver rows)
    b1     : (1, H), w2: (H, O), b2: (1, O)
    o_ref  : (TB, Epb, O)    sigmoid outputs, torch edge ordering per batch
    """
    # Hoist resident operands out of the per-batch loop.
    sel_s = ss_ref[...]
    sel_r = sr_ref[...]
    w1s = w1s_ref[...]
    w1r = w1r_ref[...]
    b1 = b1_ref[...]
    w2 = w2_ref[...]
    b2 = b2_ref[...]

    for t in range(x_ref.shape[0]):            # static unroll over batch tile
        x = x_ref[t]                                                   # (N, F)
        # Layer 1, factored per node (each node projected exactly once).
        ps = jnp.dot(x, w1s, preferred_element_type=jnp.float32)       # (N, H)
        pr = jnp.dot(x, w1r, preferred_element_type=jnp.float32)       # (N, H)
        # Expand to edges via constant one-hot selection matmuls.
        es = jnp.dot(sel_s, ps, preferred_element_type=jnp.float32)    # (Epb, H)
        er = jnp.dot(sel_r, pr, preferred_element_type=jnp.float32)    # (Epb, H)
        h = jnp.maximum(es + er + b1, 0.0)                             # ReLU
        y = jnp.dot(h, w2, preferred_element_type=jnp.float32) + b2    # (Epb, O)
        # Sigmoid with the divide on the EUP (approx reciprocal slot).
        o_ref[t] = pl.reciprocal(1.0 + jnp.exp(-y), approx=True).astype(o_ref.dtype)


def gnn_edge_mlp_pallas(states, sel_s, sel_r, w1_s, w1_r, b1, w2, b2,
                        *, max_tile_b=8):
    """Runs the fused GNN edge MLP over all batches. Returns (B, Epb, O)."""
    B, N, F = states.shape
    Epb = sel_s.shape[0]
    H = w1_s.shape[1]
    O = w2.shape[1]

    # Batches per grid step: amortize ~0.35us per-step overhead, but keep the
    # grid >= 2 blocks so both v7x TensorCores are fed (dimension "parallel").
    tile_b = max(1, min(max_tile_b, B // 2))
    b_pad = pl.cdiv(B, tile_b) * tile_b
    if b_pad != B:
        # Tiny pad on the (B, N, F) node table only (never the edge matrix).
        states = jnp.pad(states, ((0, b_pad - B), (0, 0), (0, 0)))

    grid = (b_pad // tile_b,)
    out = pl.pallas_call(
        _gnn_edge_mlp_kernel,
        out_shape=jax.ShapeDtypeStruct((b_pad, Epb, O), jnp.float32),
        grid_spec=pltpu.PrefetchScalarGridSpec(
            num_scalar_prefetch=0,
            grid=grid,
            in_specs=[
                pl.BlockSpec((tile_b, N, F), lambda i: (i, 0, 0)),  # node feats
                pl.BlockSpec((Epb, N), lambda i: (0, 0)),           # sender sel (resident)
                pl.BlockSpec((Epb, N), lambda i: (0, 0)),           # receiver sel (resident)
                pl.BlockSpec((F, H), lambda i: (0, 0)),             # W1 sender half
                pl.BlockSpec((F, H), lambda i: (0, 0)),             # W1 receiver half
                pl.BlockSpec((1, H), lambda i: (0, 0)),             # b1
                pl.BlockSpec((H, O), lambda i: (0, 0)),             # W2
                pl.BlockSpec((1, O), lambda i: (0, 0)),             # b2
            ],
            out_specs=pl.BlockSpec((tile_b, Epb, O), lambda i: (i, 0, 0)),
        ),
        compiler_params=pltpu.CompilerParams(
            dimension_semantics=("parallel",)),
    )(states, sel_s, sel_r, w1_s, w1_r, b1, w2, b2)
    return out[:B]


class TransitionGNNPallas:
    """GNN-based transition function (JAX/Pallas port of TransitionGNN)."""

    def __init__(self, input_dim, hidden_dim, action_dim, num_agents,
                 output_dim, num_time_steps=4, *, key):
        self.input_dim = input_dim
        self.hidden_dim = hidden_dim
        self.action_dim = action_dim      # unused in forward (matches reference)
        self.num_agents = num_agents
        self.output_dim = output_dim
        self.num_time_steps = num_time_steps

        feat = num_time_steps * input_dim
        in_features = feat * 2
        # nn.Linear default init: U(-1/sqrt(fan_in), +1/sqrt(fan_in)).
        k1, k2, k3, k4 = jax.random.split(key, 4)
        bound1 = 1.0 / np.sqrt(in_features)
        w1 = jax.random.uniform(k1, (in_features, hidden_dim), jnp.float32,
                                -bound1, bound1)
        self.w1_s = w1[:feat]          # rows multiplying the sender features
        self.w1_r = w1[feat:]          # rows multiplying the receiver features
        self.b1 = jax.random.uniform(k2, (1, hidden_dim), jnp.float32,
                                     -bound1, bound1)
        bound2 = 1.0 / np.sqrt(hidden_dim)
        self.w2 = jax.random.uniform(k3, (hidden_dim, output_dim), jnp.float32,
                                     -bound2, bound2)
        self.b2 = jax.random.uniform(k4, (1, output_dim), jnp.float32,
                                     -bound2, bound2)

        self._sel_cache_n = None
        self._sel_s = None
        self._sel_r = None

    def _selection_matrices(self, num_agents):
        """Constant one-hot (Epb, N) sender/receiver selectors, torch edge order."""
        if self._sel_cache_n != num_agents:
            adj = np.ones((num_agents, num_agents), np.float32) - np.eye(
                num_agents, dtype=np.float32)
            rows, cols = np.nonzero(adj)   # row-major == torch.nonzero order
            e = num_agents * (num_agents - 1)
            sel_s = np.zeros((e, num_agents), np.float32)
            sel_r = np.zeros((e, num_agents), np.float32)
            sel_s[np.arange(e), rows] = 1.0
            sel_r[np.arange(e), cols] = 1.0
            self._sel_cache_n = num_agents
            self._sel_s = jnp.asarray(sel_s)
            self._sel_r = jnp.asarray(sel_r)
        return self._sel_s, self._sel_r

    def __call__(self, states):
        # states: (B, N, num_time_steps * input_dim)
        B, N, F = states.shape
        assert N > 1, "forward only defined for num_nodes > 1 (as in reference)"
        assert F == self.num_time_steps * self.input_dim
        sel_s, sel_r = self._selection_matrices(N)
        edge_out = gnn_edge_mlp_pallas(states, sel_s, sel_r,
                                       self.w1_s, self.w1_r, self.b1,
                                       self.w2, self.b2)          # (B, Epb, O)
        return edge_out.reshape(B, N, -1)      # (B, N, (N-1)*output_dim)


def _reference_forward(states, w1_s, w1_r, b1, w2, b2):
    """Pure-JAX reference (flattened-node gather semantics, see TODO above)."""
    B, N, F = states.shape
    adj = np.ones((N, N)) - np.eye(N)
    rows, cols = np.nonzero(adj)
    row = np.concatenate([rows + b * N for b in range(B)]).astype(np.int32)
    col = np.concatenate([cols + b * N for b in range(B)]).astype(np.int32)
    flat = states.reshape(B * N, F)
    x = jnp.concatenate([flat[row], flat[col]], axis=1)
    w1 = jnp.concatenate([w1_s, w1_r], axis=0)
    h = jax.nn.relu(x @ w1 + b1)
    y = jax.nn.sigmoid(h @ w2 + b2)
    return y.reshape(B, N, -1)


if __name__ == "__main__":
    key = jax.random.PRNGKey(0)
    k_param, k_state = jax.random.split(key)

    # Small, module-consistent shapes.
    batch = 2
    num_agents = 4
    input_dim = 3
    hidden_dim = 32
    action_dim = 5
    output_dim = 8
    num_time_steps = 4

    model = TransitionGNNPallas(input_dim, hidden_dim, action_dim, num_agents,
                                output_dim, num_time_steps=num_time_steps,
                                key=k_param)
    states = jax.random.normal(
        k_state, (batch, num_agents, num_time_steps * input_dim),
        dtype=jnp.float32)

    out = model(states)
    out = jax.block_until_ready(out)

    assert out.shape == (batch, num_agents, (num_agents - 1) * output_dim), out.shape
    assert bool(jnp.all(jnp.isfinite(out)))
    # Sigmoid range (small slack for the EUP approximate reciprocal).
    assert bool(jnp.all((out >= -1e-3) & (out <= 1.0 + 1e-3)))

    ref = _reference_forward(states, model.w1_s, model.w1_r, model.b1,
                             model.w2, model.b2)
    assert bool(jnp.allclose(out, ref, atol=2e-3, rtol=2e-3)), \
        float(jnp.max(jnp.abs(out - ref)))

    print("KERNEL_OK")
</pallas_src>

<mosaic_0001>
module attributes {stable_mosaic.version = 11 : i64} {
  func.func @_gnn_edge_mlp_kernel(%arg0: i32, %arg1: memref<1x4x12xf32, #tpu.memory_space<vmem>>, %arg2: memref<12x4xf32, #tpu.memory_space<vmem>>, %arg3: memref<12x4xf32, #tpu.memory_space<vmem>>, %arg4: memref<12x32xf32, #tpu.memory_space<vmem>>, %arg5: memref<12x32xf32, #tpu.memory_space<vmem>>, %arg6: memref<1x32xf32, #tpu.memory_space<vmem>>, %arg7: memref<32x8xf32, #tpu.memory_space<vmem>>, %arg8: memref<1x8xf32, #tpu.memory_space<vmem>>, %arg9: memref<1x12x8xf32, #tpu.memory_space<vmem>>) attributes {dimension_semantics = [#tpu.dimension_semantics<parallel>], iteration_bounds = array<i64: 2>, scalar_prefetch = 0 : i64, scratch_operands = 0 : i64, tpu.core_type = #tpu.core_type<tc>, window_params = [{transform_indices = @transform_0, window_bounds = array<i64: 1, 4, 12>}, {pipeline_mode = #tpu.pipeline_mode<synchronous>, transform_indices = @transform_1, window_bounds = array<i64: 12, 4>}, {pipeline_mode = #tpu.pipeline_mode<synchronous>, transform_indices = @transform_2, window_bounds = array<i64: 12, 4>}, {pipeline_mode = #tpu.pipeline_mode<synchronous>, transform_indices = @transform_3, window_bounds = array<i64: 12, 32>}, {pipeline_mode = #tpu.pipeline_mode<synchronous>, transform_indices = @transform_4, window_bounds = array<i64: 12, 32>}, {pipeline_mode = #tpu.pipeline_mode<synchronous>, transform_indices = @transform_5, window_bounds = array<i64: 1, 32>}, {pipeline_mode = #tpu.pipeline_mode<synchronous>, transform_indices = @transform_6, window_bounds = array<i64: 32, 8>}, {pipeline_mode = #tpu.pipeline_mode<synchronous>, transform_indices = @transform_7, window_bounds = array<i64: 1, 8>}, {transform_indices = @transform_8, window_bounds = array<i64: 1, 12, 8>}]} {
    %c0 = arith.constant 0 : index
    %c0_0 = arith.constant 0 : index
    %0 = vector.load %arg2[%c0, %c0_0] : memref<12x4xf32, #tpu.memory_space<vmem>>, vector<12x4xf32>
    %c0_1 = arith.constant 0 : index
    %c0_2 = arith.constant 0 : index
    %1 = vector.load %arg3[%c0_1, %c0_2] : memref<12x4xf32, #tpu.memory_space<vmem>>, vector<12x4xf32>
    %c0_3 = arith.constant 0 : index
    %c0_4 = arith.constant 0 : index
    %2 = vector.load %arg4[%c0_3, %c0_4] : memref<12x32xf32, #tpu.memory_space<vmem>>, vector<12x32xf32>
    %c0_5 = arith.constant 0 : index
    %c0_6 = arith.constant 0 : index
    %3 = vector.load %arg5[%c0_5, %c0_6] : memref<12x32xf32, #tpu.memory_space<vmem>>, vector<12x32xf32>
    %c0_7 = arith.constant 0 : index
    %c0_8 = arith.constant 0 : index
    %4 = vector.load %arg6[%c0_7, %c0_8] : memref<1x32xf32, #tpu.memory_space<vmem>>, vector<1x32xf32>
    %c0_9 = arith.constant 0 : index
    %c0_10 = arith.constant 0 : index
    %5 = vector.load %arg7[%c0_9, %c0_10] : memref<32x8xf32, #tpu.memory_space<vmem>>, vector<32x8xf32>
    %c0_11 = arith.constant 0 : index
    %c0_12 = arith.constant 0 : index
    %6 = vector.load %arg8[%c0_11, %c0_12] : memref<1x8xf32, #tpu.memory_space<vmem>>, vector<1x8xf32>
    %c0_13 = arith.constant 0 : index
    %c0_14 = arith.constant 0 : index
    %c0_15 = arith.constant 0 : index
    %7 = vector.load %arg1[%c0_13, %c0_14, %c0_15] : memref<1x4x12xf32, #tpu.memory_space<vmem>>, vector<1x4x12xf32>
    %8 = vector.shape_cast %7 : vector<1x4x12xf32> to vector<4x12xf32>
    %cst = arith.constant dense<0.000000e+00> : vector<4x32xf32>
    %9 = tpu.matmul %8, %2, %cst {dimension_numbers = #tpu.dot_dimension_numbers<[1], [0], [0], [1], [0, 0, 1, 1], [], []>} : vector<4x12xf32>, vector<12x32xf32>, vector<4x32xf32> -> vector<4x32xf32>
    %cst_16 = arith.constant dense<0.000000e+00> : vector<4x32xf32>
    %10 = tpu.matmul %8, %3, %cst_16 {dimension_numbers = #tpu.dot_dimension_numbers<[1], [0], [0], [1], [0, 0, 1, 1], [], []>} : vector<4x12xf32>, vector<12x32xf32>, vector<4x32xf32> -> vector<4x32xf32>
    %cst_17 = arith.constant dense<0.000000e+00> : vector<12x32xf32>
    %11 = tpu.matmul %0, %9, %cst_17 {dimension_numbers = #tpu.dot_dimension_numbers<[1], [0], [0], [1], [0, 0, 1, 1], [], []>} : vector<12x4xf32>, vector<4x32xf32>, vector<12x32xf32> -> vector<12x32xf32>
    %cst_18 = arith.constant dense<0.000000e+00> : vector<12x32xf32>
    %12 = tpu.matmul %1, %10, %cst_18 {dimension_numbers = #tpu.dot_dimension_numbers<[1], [0], [0], [1], [0, 0, 1, 1], [], []>} : vector<12x4xf32>, vector<4x32xf32>, vector<12x32xf32> -> vector<12x32xf32>
    %13 = arith.addf %11, %12 : vector<12x32xf32>
    %14 = vector.broadcast %4 : vector<1x32xf32> to vector<12x32xf32>
    %15 = arith.addf %13, %14 : vector<12x32xf32>
    %cst_19 = arith.constant 0.000000e+00 : f32
    %16 = vector.broadcast %cst_19 : f32 to vector<12x32xf32>
    %17 = arith.maximumf %15, %16 : vector<12x32xf32>
    %cst_20 = arith.constant dense<0.000000e+00> : vector<12x8xf32>
    %18 = tpu.matmul %17, %5, %cst_20 {dimension_numbers = #tpu.dot_dimension_numbers<[1], [0], [0], [1], [0, 0, 1, 1], [], []>} : vector<12x32xf32>, vector<32x8xf32>, vector<12x8xf32> -> vector<12x8xf32>
    %19 = vector.broadcast %6 : vector<1x8xf32> to vector<12x8xf32>
    %20 = arith.addf %18, %19 : vector<12x8xf32>
    %cst_21 = arith.constant 0.000000e+00 : f32
    %21 = vector.broadcast %cst_21 : f32 to vector<12x8xf32>
    %22 = arith.subf %21, %20 : vector<12x8xf32>
    %23 = math.exp %22 : vector<12x8xf32>
    %cst_22 = arith.constant 1.000000e+00 : f32
    %24 = vector.broadcast %cst_22 : f32 to vector<12x8xf32>
    %25 = arith.addf %24, %23 : vector<12x8xf32>
    %26 = tpu.reciprocal %25 {approx = true} : vector<12x8xf32> -> vector<12x8xf32>
    %c0_23 = arith.constant 0 : index
    %c0_24 = arith.constant 0 : index
    %c0_25 = arith.constant 0 : index
    %27 = vector.load %arg9[%c0_23, %c0_24, %c0_25] : memref<1x12x8xf32, #tpu.memory_space<vmem>>, vector<1x12x8xf32>
    %28 = vector.shape_cast %27 : vector<1x12x8xf32> to vector<12x8xf32>
    %29 = vector.shape_cast %26 : vector<12x8xf32> to vector<1x12x8xf32>
    tpu.vector_store %arg9[%c0_23, %c0_24, %c0_25], %29 {strides = array<i32>} : memref<1x12x8xf32, #tpu.memory_space<vmem>>, vector<1x12x8xf32>,
    return
  }
  func.func @transform_0(%arg0: i32) -> (i32, i32, i32) {
    %c0_i32 = arith.constant 0 : i32
    %c0_i32_0 = arith.constant 0 : i32
    %c0_i32_1 = arith.constant 0 : i32
    return %arg0, %c0_i32, %c0_i32_0 : i32, i32, i32
  }
  func.func @transform_1(%arg0: i32) -> (i32, i32) {
    %c0_i32 = arith.constant 0 : i32
    %c0_i32_0 = arith.constant 0 : i32
    %c0_i32_1 = arith.constant 0 : i32
    return %c0_i32, %c0_i32_0 : i32, i32
  }
  func.func @transform_2(%arg0: i32) -> (i32, i32) {
    %c0_i32 = arith.constant 0 : i32
    %c0_i32_0 = arith.constant 0 : i32
    %c0_i32_1 = arith.constant 0 : i32
    return %c0_i32, %c0_i32_0 : i32, i32
  }
  func.func @transform_3(%arg0: i32) -> (i32, i32) {
    %c0_i32 = arith.constant 0 : i32
    %c0_i32_0 = arith.constant 0 : i32
    %c0_i32_1 = arith.constant 0 : i32
    return %c0_i32, %c0_i32_0 : i32, i32
  }
  func.func @transform_4(%arg0: i32) -> (i32, i32) {
    %c0_i32 = arith.constant 0 : i32
    %c0_i32_0 = arith.constant 0 : i32
    %c0_i32_1 = arith.constant 0 : i32
    return %c0_i32, %c0_i32_0 : i32, i32
  }
  func.func @transform_5(%arg0: i32) -> (i32, i32) {
    %c0_i32 = arith.constant 0 : i32
    %c0_i32_0 = arith.constant 0 : i32
    %c0_i32_1 = arith.constant 0 : i32
    return %c0_i32, %c0_i32_0 : i32, i32
  }
  func.func @transform_6(%arg0: i32) -> (i32, i32) {
    %c0_i32 = arith.constant 0 : i32
    %c0_i32_0 = arith.constant 0 : i32
    %c0_i32_1 = arith.constant 0 : i32
    return %c0_i32, %c0_i32_0 : i32, i32
  }
  func.func @transform_7(%arg0: i32) -> (i32, i32) {
    %c0_i32 = arith.constant 0 : i32
    %c0_i32_0 = arith.constant 0 : i32
    %c0_i32_1 = arith.constant 0 : i32
    return %c0_i32, %c0_i32_0 : i32, i32
  }
  func.func @transform_8(%arg0: i32) -> (i32, i32, i32) {
    %c0_i32 = arith.constant 0 : i32
    %c0_i32_0 = arith.constant 0 : i32
    %c0_i32_1 = arith.constant 0 : i32
    return %arg0, %c0_i32, %c0_i32_0 : i32, i32, i32
  }
}

</mosaic_0001>

<bundles_post_ra>
// kernel: tpu_custom_call.1
= control target key start
LH: loop header
LB: loop body
LE: loop exit
PB: predicated region body
PF: predicated region fallthrough
CT: control target
= control target key end

     0   :  { %s978_s27 = smov 0   ;;  %s1050_s0 = inlined_call_operand.vmem [shape: f32[2,4,12], index: 0, kind: input, shape index: {}]   ;;  %s1051_s1 = inlined_call_operand.vmem [shape: f32[12,4], index: 1, kind: input, shape index: {}]   ;;  %s1052_s2 = inlined_call_operand.vmem [shape: f32[12,4], index: 2, kind: input, shape index: {}]   ;;  %s1053_s3 = inlined_call_operand.vmem [shape: f32[12,32], index: 3, kind: input, shape index: {}]   ;;  %s1054_s4 = inlined_call_operand.vmem [shape: f32[12,32], index: 4, kind: input, shape index: {}]   ;;  %s1055_s5 = inlined_call_operand.vmem [shape: f32[1,32], index: 5, kind: input, shape index: {}]   ;;  %s1056_s6 = inlined_call_operand.vmem [shape: f32[32,8], index: 6, kind: input, shape index: {}]   ;;  %s1057_s7 = inlined_call_operand.vmem [shape: f32[1,8], index: 7, kind: input, shape index: {}]   ;;  %s1058_s8 = inlined_call_operand.vmem [shape: f32[2,12,8], index: 8, kind: output, shape index: {}]  }
   0x1 LB: > { %s805_s28 = sadd.s32 4294967295, %s927_s27   ;;  %p809_p0 = scmp.ge.s32.totalorder %s927_s27, 1  ;;  %s927_s27 = sphi %s978_s27, %s18_s27  }
   0x2   : > { %p261_p1 = scmp.lt.s32.totalorder %s927_s27, 3 }
   0x4   : > { %p262_p2 = pnand %p809_p0, %p261_p1 }
   0x5   : > { %v309_v0 = vld [vmem:[%s1054_s4] sm:$0xff] (!%p262_p2)  ;;  %v310_v1 = vld [vmem:[%s1054_s4 + $0x8] sm:$0xf] (!%p262_p2)  ;;  %vm322_vm0 = vcmask (!%p262_p2), 1043456   ;;  %v929_v2 = vmov (!%p262_p2), 0.0|0.0   ;;  %vm930_vm1 = vmmov (!%p262_p2), 1  }
   0x6   : > { %265 = sbr.rel (%p262_p2) target bundleno = 701 (0x2bd), region = 52  ;;  %887 = vmatprep.subr.bf16.mxu1 (!%p262_p2), %v929_v2  ;;  %vm885_vm2 = vmpackc.low (!%p262_p2), %vm322_vm0, %vm930_vm1  ;;  %v888_v3 = vpack.c.bf16 (!%p262_p2), %v310_v1, %v309_v0  ;;  %883 = vmatprep.subr.bf16.mxu0 (!%p262_p2), %v929_v2  ;;  %v307_v4 = vld [vmem:[%s1053_s3] sm:$0xff] (!%p262_p2)  ;;  %v308_v5 = vld [vmem:[%s1053_s3 + $0x8] sm:$0xf] (!%p262_p2)  ;;  %p294_p3 = scmp.lt.s32.totalorder (!%p262_p2), %s805_s28, 1  ;;  %vm931_vm3 = vmmov (!%p262_p2), 0  }
   0x7   : > { %v932_v6 = vmov (!%p262_p2), 0.0   ;;  %v884_v7 = vpack.c.bf16 (!%p262_p2), %v308_v5, %v307_v4  ;;  %vm318_vm4 = vcmask (!%p262_p2), 97280   ;;  %v305_v9 = vld [vmem:[%s1052_s2] sm:$0xff] (!%p262_p2)  ;;  %vm469_vm5 = vcmask (!%p262_p2), 31744   ;;  %v313_v11 = vld [vmem:[%s1056_s6 + $0x8] sm:$0xff] (!%p262_p2)  ;;  %v314_v20 = vld [vmem:[%s1056_s6 + $0x10] sm:$0xff] (!%p262_p2) }
   0x8   : > { %859 = vmatprep.mubr.msk.f32.mxu1 (!%p262_p2), %vm931_vm3, %v932_v6  ;;  %852 = vmatprep.mubr.msk.f32.mxu0 (!%p262_p2), %vm931_vm3, %v932_v6  ;;  %v312_v10 = vld [vmem:[%s1056_s6] sm:$0xff] (!%p262_p2)  ;;  %v306_v15 = vld [vmem:[%s1052_s2 + $0x8] sm:$0xf] (!%p262_p2)  ;;  %v315_v21 = vld [vmem:[%s1056_s6 + $0x18] sm:$0xff] (!%p262_p2)  ;;  %vm654_vm6 = vcmask (!%p262_p2), 261120   ;;  %vm748_vm7 = vcmask (!%p262_p2), 60416  }
   0x9   : > { %890 = vmatpush3.bf16.msk.msra.mxu1 (!%p262_p2), %vm885_vm2, %v888_v3  ;;  %886 = vmatpush3.bf16.msk.msra.mxu0 (!%p262_p2), %vm885_vm2, %v884_v7  ;;  %v891_v12 = vpack.c.bf16 (!%p262_p2), %v313_v11, %v312_v10  ;;  %v303_v18 = vld [vmem:[%s1051_s1] sm:$0xff] (!%p262_p2)  ;;  %v304_v19 = vld [vmem:[%s1051_s1 + $0x8] sm:$0xf] (!%p262_p2)  ;;  %v895_v22 = vpack.c.bf16 (!%p262_p2), %v315_v21, %v314_v20  ;;  %vm746_vm8 = vcmask (!%p262_p2), 64512  }
   0xa   : > { %v823_v23 = vld [vmem:[%s1055_s5] ss:$0 sm:$0xff] (!%p262_p2) }
   0xb   : > { %892 = vmatprep.subr.bf16.mxu1 (!%p262_p2), %v891_v12  ;;  %v824_v30 = vld [vmem:[%s1057_s7] ss:$0 sm:$0xff] (!%p262_p2) }
   0xd   : > { %s1060_s28 = smov (!%p294_p3, %s805_s28), 1 }
   0xe   : > { %s810_s15 = sshll.u32 %s1060_s28, 2  ;;  %s829_s19 = sshll.u32 %s1060_s28, 4 }
   0xf   : > { %s297_s18 = scalar_lea.vmem %s1050_s0, %s810_s15  ;;  %s302_s22 = scalar_lea.vmem %s1058_s8, %s829_s19 }
  0x10   : > { %v317_v8 = vld [vmem:[%s297_s18] sm:$0xf] }
  0x11   : > { %860 = vmatmul.mubr.msk.f32.vlgmr.msra.gmra.mrb[0].mxu1 %vm318_vm4, %v317_v8  ;;  %853 = vmatmul.mubr.msk.f32.vlgmr.msra.gmra.mrb[0].mxu0 %vm318_vm4, %v317_v8 }
  0x12   : > { %864 = vmatprep.mubr.msk.f32.mxu0 %vm469_vm5, %v305_v9  ;;  %894 = vmatpush3.bf16.msra.mxu1 %v891_v12 }
  0x13   : > { %896 = vmatprep.subr.bf16.mxu1 %v895_v22 }
  0x16   : > { %898 = vmatpush3.bf16.msra.mxu1 %v895_v22 }
  0xe4   : > { %v465_v13 = vpop.f32.mrb[0].mxu1  ;;  %v392_v14 = vpop.f32.mrb[0].mxu0 }
  0xe5   : > { %v861_v16 = vpop.f32.mrb[1].mxu1  ;;  %862 = vmatprep.subr.msk.mxu0 %vm322_vm0, %v465_v13  ;;  %v854_v17 = vpop.f32.mrb[1].mxu0 }
  0xe6   : > { %863 = vmatpush3.msk.msra.mxu0 %vm322_vm0, %v465_v13 }
  0xe7   : > { %865 = vmatmul.mubr.msk.f32.vlgmr.msra.gmra.mrb[2].mxu0 %vm469_vm5, %v306_v15  ;;  %867 = vmatprep.subr.msk.mxu0 %vm322_vm0, %v392_v14 }
  0xe8   : > { %868 = vmatpush3.msk.msra.mxu0 %vm322_vm0, %v392_v14  ;;  %869 = vmatprep.mubr.msk.f32.mxu0 %vm469_vm5, %v303_v18 }
  0xef   : > { %870 = vmatmul.mubr.msk.f32.vlgmr.msra.gmra.mrb[2].mxu0 %vm469_vm5, %v304_v19 }
 0x1c2   : > { %v871_v24 = vpop.f32.mrb[2].mxu0 }
 0x1c3   : > { %v645_v25 = vadd.f32 %v871_v24, %v823_v23  ;;  %v629_v26 = vpop.f32.mrb[3].mxu0 }
 0x1c4   : > { %v644_v27 = vadd.f32 %v823_v23, %v629_v26 }
 0x1c5   : > { %v647_v29 = vmax.f32 %v645_v25, 0.0 }
 0x1c6   : > { %v646_v28 = vmax.f32 %v644_v27, 0.0 }
 0x1c8   : > { %880 = vmatprep.mubr.msk.f32.mxu1 %vm654_vm6, %v646_v28 }
 0x1c9   : > { %881 = vmatmul.mubr.msk.f32.vlgmr.msra.gmra.mrb[2].mxu1 %vm654_vm6, %v647_v29 }
 0x29c   : > { %v882_v31 = vpop.f32.mrb[2].mxu1 }
 0x29d   : > { %v733_v32 = vadd.f32 %v882_v31, %v824_v30  ;;  %v727_v33 = vpop.f32.mrb[3].mxu1 }
 0x29e   : > { %v728_v34 = vadd.f32 %v824_v30, %v727_v33 }
 0x29f   : > { %v737_v35 = vsub.f32 0.0, %v733_v32 }
 0x2a0   : > { %v736_v36 = vsub.f32 0.0, %v728_v34 }
 0x2a1   : > { %v740_v37 = vmul.f32 1.442695, %v737_v35 }
 0x2a2   : > { %v738_v38 = vmul.f32 1.442695, %v736_v36 }
 0x2a3   : > { %913 = vpow2.f32 %v740_v37 }
 0x2a4   : > { %915 = vpow2.f32 %v738_v38 }
 0x2ad   : > { %v914_v39 = vpop.eup %913 }
 0x2ae   : > { %v916_v40 = vpop.eup %915  ;;  %v743_v41 = vadd.f32 1.0, %v914_v39 }
 0x2af   : > { %v742_v42 = vadd.f32 1.0, %v916_v40 }
 0x2b0   : > { %917 = vrcp.f32 %v743_v41 }
 0x2b1   : > { %919 = vrcp.f32 %v742_v42 }
 0x2ba   : > { %v918_v43 = vpop.eup %917 }
 0x2bb   : > { %v920_v44 = vpop.eup %919  ;;  %749 = vst.msk [vmem:[%s302_s22 + $0x8] sm:$0xf] %vm748_vm7, %v918_v43 }
 0x2bc   : > { %747 = vst.msk [vmem:[%s302_s22] sm:$0xff] %vm746_vm8, %v920_v44 }
 0x2bd PF: > { %s18_s27 = sadd.s32 1, %s927_s27  }
 0x2be   : > { %p15_p4 = scmp.ge.s32.totalorder %s18_s27, 4  }
 0x2c0   :  { %17 = sbr.rel (!%p15_p4) target bundleno = 1 (0x1), region = 82 }

</bundles_post_ra>
